<compile_context>
chip_gen: v7x
topology: tpu7x:2x2x1
jax: 0.10.0
libtpu: 0.0.40
codegen_flags: <defaults>
</compile_context>

<pallas_src>
import functools

import numpy as np
import jax
import jax.numpy as jnp
from jax.experimental import pallas as pl
from jax.experimental.pallas import tpu as pltpu


def _round_up(x, m):
    return ((x + m - 1) // m) * m


def _make_fused_kernel(n_kg_layers, n_ui_layers, n_users_pad, n_items,
                       n_items_copy):
    inv_kg = 1.0 / float(n_kg_layers + 1)
    inv_ui = 1.0 / float(n_ui_layers + 1)

    def kernel(kg_adj_ref, ui_adj_ref, ent_emb_ref, user_ref,
               ent_out_ref, ui_out_ref, ui0_ref):
        # ---------------- KG propagation: mean_{l=0..L}( A^l @ E ) ----------
        kg_adj = kg_adj_ref[...]                      # bf16, lane-dense tiles
        cur = ent_emb_ref[...].astype(jnp.float32)
        acc = cur
        for _ in range(n_kg_layers):                  # small static L -> unrolled
            cur = jnp.dot(kg_adj, cur.astype(jnp.bfloat16),
                          preferred_element_type=jnp.float32)
            acc = acc + cur
        ent_mean = acc * inv_kg
        ent_out_ref[...] = ent_mean                   # full-width unmasked store

        # ------- torch.cat([user_emb, ent_mean[:n_items]]) as row copies -----
        # n_users_pad / n_items_copy are multiples of 8 -> aligned sublane
        # moves (no selector matmul, no XLU shifts).  Padding rows must be
        # real zeros so 0 * garbage never produces NaNs in the UI matmul.
        ui0_ref[...] = jnp.zeros_like(ui0_ref)
        ui0_ref[0:n_users_pad, :] = user_ref[...]
        item_block = ent_mean[0:n_items_copy, :]
        if n_items_copy != n_items:                   # static Python check
            row = jax.lax.broadcasted_iota(jnp.int32, item_block.shape, 0)
            item_block = jnp.where(row < n_items, item_block, 0.0)
        ui0_ref[n_users_pad:n_users_pad + n_items_copy, :] = item_block

        # ---------------- UI propagation ------------------------------------
        ui_adj = ui_adj_ref[...]                      # bf16
        cur = ui0_ref[...]
        acc = cur
        for _ in range(n_ui_layers):
            cur = jnp.dot(ui_adj, cur.astype(jnp.bfloat16),
                          preferred_element_type=jnp.float32)
            acc = acc + cur
        ui_out_ref[...] = acc * inv_ui

    return kernel


@functools.partial(
    jax.jit,
    static_argnames=("n_users", "n_items", "n_entities", "d",
                     "n_users_pad", "n_kg_layers", "n_ui_layers"))
def _cgkr_forward_padded(kg_adj_pad, ui_adj_pad, ent_emb_pad, user_pad, *,
                         n_users, n_items, n_entities, d, n_users_pad,
                         n_kg_layers, n_ui_layers):
    n_entities_pad, d_pad = ent_emb_pad.shape
    n_ui_pad = ui_adj_pad.shape[0]
    n_items_copy = _round_up(n_items, 8)

    vmem = pl.BlockSpec(memory_space=pltpu.MemorySpace.VMEM)
    ent_out, ui_out = pl.pallas_call(
        _make_fused_kernel(n_kg_layers, n_ui_layers, n_users_pad, n_items,
                           n_items_copy),
        out_shape=(jax.ShapeDtypeStruct((n_entities_pad, d_pad), jnp.float32),
                   jax.ShapeDtypeStruct((n_ui_pad, d_pad), jnp.float32)),
        in_specs=[vmem, vmem, vmem, vmem],
        out_specs=(vmem, vmem),
        scratch_shapes=[pltpu.VMEM((n_ui_pad, d_pad), jnp.float32)],
    )(kg_adj_pad, ui_adj_pad, ent_emb_pad, user_pad)

    # torch.split equivalent + strip the alignment padding (wrapper-side).
    user_out = ui_out[:n_users, :d]
    entity_out = ent_out[:n_entities, :d]
    return user_out, entity_out


def cgkr_forward(kg_adj, ui_adj, entity_emb, user_emb,
                 n_users, n_items, n_kg_layers, n_ui_layers):
    """Reproduces CGKR.forward(): returns (user_embeddings, entity_embeddings).

    All padding / UI-node re-indexing is static host-side numpy (done once per
    graph); the jitted pallas path only sees tile-aligned, lane-dense arrays.
    """
    kg_adj = np.asarray(kg_adj, dtype=np.float32)
    ui_adj = np.asarray(ui_adj, dtype=np.float32)
    entity_emb = np.asarray(entity_emb, dtype=np.float32)
    user_emb = np.asarray(user_emb, dtype=np.float32)

    n_entities, d = entity_emb.shape
    n_ui = n_users + n_items
    assert kg_adj.shape == (n_entities, n_entities)
    assert ui_adj.shape == (n_ui, n_ui)
    assert user_emb.shape == (n_users, d)
    assert n_items <= n_entities          # items are entities [0, n_items)

    d_pad = _round_up(d, 128)
    n_entities_pad = _round_up(n_entities, 128)
    n_users_pad = _round_up(n_users, 8)          # aligned concat offset
    n_items_copy = _round_up(n_items, 8)
    n_ui_pad = _round_up(n_users_pad + n_items_copy, 128)

    # --- zero-pad embeddings to (multiple-of-8, multiple-of-128) tiles ------
    ent_emb_pad = np.zeros((n_entities_pad, d_pad), np.float32)
    ent_emb_pad[:n_entities, :d] = entity_emb
    user_pad = np.zeros((n_users_pad, d_pad), np.float32)
    user_pad[:n_users, :d] = user_emb

    # --- zero-pad adjacencies; re-index UI nodes so the item block starts at
    #     the 8-aligned row n_users_pad (matches the in-kernel row copy) -----
    kg_adj_pad = np.zeros((n_entities_pad, n_entities_pad), np.float32)
    kg_adj_pad[:n_entities, :n_entities] = kg_adj
    perm = np.concatenate([np.arange(n_users),
                           n_users_pad + np.arange(n_items)])
    ui_adj_pad = np.zeros((n_ui_pad, n_ui_pad), np.float32)
    ui_adj_pad[np.ix_(perm, perm)] = ui_adj

    # Adjacencies are the per-layer re-read stream -> bf16 (f32 accumulate).
    kg_adj_pad = jnp.asarray(kg_adj_pad, dtype=jnp.bfloat16)
    ui_adj_pad = jnp.asarray(ui_adj_pad, dtype=jnp.bfloat16)
    ent_emb_pad = jnp.asarray(ent_emb_pad)
    user_pad = jnp.asarray(user_pad)

    return _cgkr_forward_padded(
        kg_adj_pad, ui_adj_pad, ent_emb_pad, user_pad,
        n_users=n_users, n_items=n_items, n_entities=n_entities, d=d,
        n_users_pad=n_users_pad, n_kg_layers=n_kg_layers,
        n_ui_layers=n_ui_layers)


# ------------------------- reference (pure jnp, f32) -------------------------
def _through_graph_ref(adj, emb, n_layers):
    cur = emb
    outs = [cur]
    for _ in range(n_layers):
        cur = adj @ cur
        outs.append(cur)
    return jnp.mean(jnp.stack(outs, axis=1), axis=1)


# ------------------------- synthetic graph setup ----------------------------
def build_kg_adj(kg_neighbors, n_entities, max_neighbor_size):
    # adj[i, c] = 1/max_neighbor_size for every nonzero neighbor c of entity i.
    adj = np.zeros((n_entities, n_entities), dtype=np.float32)
    for i in range(n_entities):
        for c in kg_neighbors[i]:
            if c != 0:
                adj[i, c] = 1.0 / max_neighbor_size
    return adj


def build_ui_adj(inter, n_users, n_items):
    # Symmetric bipartite adjacency with D^{-1/2} A D^{-1/2} normalization,
    # matching norm_adj(): degree = count of nonzeros per row (+1e-7), ^-0.5.
    n = n_users + n_items
    adj = np.zeros((n, n), dtype=np.float32)
    adj[:n_users, n_users:] = (inter > 0).astype(np.float32)
    adj[n_users:, :n_users] = (inter.T > 0).astype(np.float32)
    deg = (adj > 0).sum(axis=1).astype(np.float64) + 1e-7
    d = np.power(deg, -0.5)
    laplace = (d[:, None] * adj * d[None, :]).astype(np.float32)
    return laplace


if __name__ == "__main__":
    # Small config consistent with CGKR.__init__.
    n_users = 12
    n_items = 16
    n_entities = 24            # items are the first n_items entities
    embedding_size = 32
    n_kg_layers = 2
    n_ui_layers = 2
    max_neighbor_size = 4

    key = jax.random.PRNGKey(0)
    k_u, k_e, k_kg, k_ui = jax.random.split(key, 4)

    # nn.Embedding weights (padding_idx=0 -> zero row 0).
    user_emb = jax.random.normal(k_u, (n_users, embedding_size), jnp.float32) * 0.1
    user_emb = user_emb.at[0].set(0.0)
    entity_emb = jax.random.normal(k_e, (n_entities, embedding_size), jnp.float32) * 0.1
    entity_emb = entity_emb.at[0].set(0.0)

    # Synthetic raw_kg_neighbors: (n_entities, max_neighbor_size) entity ids.
    kg_neighbors = np.array(
        jax.random.randint(k_kg, (n_entities, max_neighbor_size), 0, n_entities))
    kg_adj = build_kg_adj(kg_neighbors, n_entities, max_neighbor_size)

    # Synthetic user-item interaction matrix.
    inter = np.array(
        jax.random.bernoulli(k_ui, 0.3, (n_users, n_items)).astype(np.float32))
    ui_adj = build_ui_adj(inter, n_users, n_items)

    # Run the fused Pallas forward.
    user_out, entity_out = cgkr_forward(
        kg_adj, ui_adj, entity_emb, user_emb,
        n_users, n_items, n_kg_layers, n_ui_layers)
    jax.block_until_ready((user_out, entity_out))

    # Check against a pure-jnp f32 reference of CGKR.forward().
    # Tolerance loosened vs. 1e-5 because the adjacency stream / streamed
    # matmul operand is bf16 in the kernel (accumulation stays f32).
    kg_adj_j = jnp.asarray(kg_adj)
    ui_adj_j = jnp.asarray(ui_adj)
    ent_ref = _through_graph_ref(kg_adj_j, entity_emb, n_kg_layers)
    ui_ref = _through_graph_ref(
        ui_adj_j, jnp.concatenate([user_emb, ent_ref[:n_items]], axis=0),
        n_ui_layers)
    user_ref = ui_ref[:n_users]

    np.testing.assert_allclose(np.array(entity_out), np.array(ent_ref),
                               rtol=2e-2, atol=2e-3)
    np.testing.assert_allclose(np.array(user_out), np.array(user_ref),
                               rtol=2e-2, atol=2e-3)

    print("KERNEL_OK")
</pallas_src>

<mosaic_0001>
module attributes {stable_mosaic.version = 11 : i64} {
  func.func @kernel(%arg0: memref<128x128xbf16, #tpu.memory_space<vmem>>, %arg1: memref<128x128xbf16, #tpu.memory_space<vmem>>, %arg2: memref<128x128xf32, #tpu.memory_space<vmem>>, %arg3: memref<16x128xf32, #tpu.memory_space<vmem>>, %arg4: memref<128x128xf32, #tpu.memory_space<vmem>>, %arg5: memref<128x128xf32, #tpu.memory_space<vmem>>, %arg6: memref<128x128xf32, #tpu.memory_space<vmem>>) attributes {dimension_semantics = [], scalar_prefetch = 0 : i64, scratch_operands = 1 : i64, tpu.core_type = #tpu.core_type<tc>} {
    %c0 = arith.constant 0 : index
    %c0_0 = arith.constant 0 : index
    %0 = vector.load %arg0[%c0, %c0_0] : memref<128x128xbf16, #tpu.memory_space<vmem>>, vector<128x128xbf16>
    %c0_1 = arith.constant 0 : index
    %c0_2 = arith.constant 0 : index
    %1 = vector.load %arg2[%c0_1, %c0_2] : memref<128x128xf32, #tpu.memory_space<vmem>>, vector<128x128xf32>
    %2 = arith.truncf %1 : vector<128x128xf32> to vector<128x128xbf16>
    %cst = arith.constant dense<0.000000e+00> : vector<128x128xf32>
    %3 = tpu.matmul %0, %2, %cst {dimension_numbers = #tpu.dot_dimension_numbers<[1], [0], [0], [1], [0, 0, 1, 1], [], []>} : vector<128x128xbf16>, vector<128x128xbf16>, vector<128x128xf32> -> vector<128x128xf32>
    %4 = arith.addf %1, %3 : vector<128x128xf32>
    %5 = arith.truncf %3 : vector<128x128xf32> to vector<128x128xbf16>
    %cst_3 = arith.constant dense<0.000000e+00> : vector<128x128xf32>
    %6 = tpu.matmul %0, %5, %cst_3 {dimension_numbers = #tpu.dot_dimension_numbers<[1], [0], [0], [1], [0, 0, 1, 1], [], []>} : vector<128x128xbf16>, vector<128x128xbf16>, vector<128x128xf32> -> vector<128x128xf32>
    %7 = arith.addf %4, %6 : vector<128x128xf32>
    %cst_4 = arith.constant 0.333333343 : f32
    %8 = vector.broadcast %cst_4 : f32 to vector<128x128xf32>
    %9 = arith.mulf %7, %8 : vector<128x128xf32>
    %c0_5 = arith.constant 0 : index
    %c0_6 = arith.constant 0 : index
    %10 = vector.load %arg4[%c0_5, %c0_6] : memref<128x128xf32, #tpu.memory_space<vmem>>, vector<128x128xf32>
    tpu.vector_store %arg4[%c0_5, %c0_6], %9 {strides = array<i32>} : memref<128x128xf32, #tpu.memory_space<vmem>>, vector<128x128xf32>,
    %cst_7 = arith.constant 0.000000e+00 : f32
    %11 = vector.broadcast %cst_7 : f32 to vector<128x128xf32>
    %c0_8 = arith.constant 0 : index
    %c0_9 = arith.constant 0 : index
    %12 = vector.load %arg6[%c0_8, %c0_9] : memref<128x128xf32, #tpu.memory_space<vmem>>, vector<128x128xf32>
    tpu.vector_store %arg6[%c0_8, %c0_9], %11 {strides = array<i32>} : memref<128x128xf32, #tpu.memory_space<vmem>>, vector<128x128xf32>,
    %c0_10 = arith.constant 0 : index
    %c0_11 = arith.constant 0 : index
    %13 = vector.load %arg3[%c0_10, %c0_11] : memref<16x128xf32, #tpu.memory_space<vmem>>, vector<16x128xf32>
    %c0_12 = arith.constant 0 : index
    %c0_13 = arith.constant 0 : index
    %14 = vector.load %arg6[%c0_12, %c0_13] : memref<128x128xf32, #tpu.memory_space<vmem>>, vector<16x128xf32>
    tpu.vector_store %arg6[%c0_12, %c0_13], %13 {strides = array<i32>} : memref<128x128xf32, #tpu.memory_space<vmem>>, vector<16x128xf32>,
    %15 = vector.extract_strided_slice %9 {offsets = [0, 0], sizes = [16, 128], strides = [1, 1]} : vector<128x128xf32> to vector<16x128xf32>
    %c16 = arith.constant 16 : index
    %c0_14 = arith.constant 0 : index
    %16 = vector.load %arg6[%c16, %c0_14] : memref<128x128xf32, #tpu.memory_space<vmem>>, vector<16x128xf32>
    tpu.vector_store %arg6[%c16, %c0_14], %15 {strides = array<i32>} : memref<128x128xf32, #tpu.memory_space<vmem>>, vector<16x128xf32>,
    %c0_15 = arith.constant 0 : index
    %c0_16 = arith.constant 0 : index
    %17 = vector.load %arg1[%c0_15, %c0_16] : memref<128x128xbf16, #tpu.memory_space<vmem>>, vector<128x128xbf16>
    %c0_17 = arith.constant 0 : index
    %c0_18 = arith.constant 0 : index
    %18 = vector.load %arg6[%c0_17, %c0_18] : memref<128x128xf32, #tpu.memory_space<vmem>>, vector<128x128xf32>
    %19 = arith.truncf %18 : vector<128x128xf32> to vector<128x128xbf16>
    %cst_19 = arith.constant dense<0.000000e+00> : vector<128x128xf32>
    %20 = tpu.matmul %17, %19, %cst_19 {dimension_numbers = #tpu.dot_dimension_numbers<[1], [0], [0], [1], [0, 0, 1, 1], [], []>} : vector<128x128xbf16>, vector<128x128xbf16>, vector<128x128xf32> -> vector<128x128xf32>
    %21 = arith.addf %18, %20 : vector<128x128xf32>
    %22 = arith.truncf %20 : vector<128x128xf32> to vector<128x128xbf16>
    %cst_20 = arith.constant dense<0.000000e+00> : vector<128x128xf32>
    %23 = tpu.matmul %17, %22, %cst_20 {dimension_numbers = #tpu.dot_dimension_numbers<[1], [0], [0], [1], [0, 0, 1, 1], [], []>} : vector<128x128xbf16>, vector<128x128xbf16>, vector<128x128xf32> -> vector<128x128xf32>
    %24 = arith.addf %21, %23 : vector<128x128xf32>
    %cst_21 = arith.constant 0.333333343 : f32
    %25 = vector.broadcast %cst_21 : f32 to vector<128x128xf32>
    %26 = arith.mulf %24, %25 : vector<128x128xf32>
    %c0_22 = arith.constant 0 : index
    %c0_23 = arith.constant 0 : index
    %27 = vector.load %arg5[%c0_22, %c0_23] : memref<128x128xf32, #tpu.memory_space<vmem>>, vector<128x128xf32>
    tpu.vector_store %arg5[%c0_22, %c0_23], %26 {strides = array<i32>} : memref<128x128xf32, #tpu.memory_space<vmem>>, vector<128x128xf32>,
    return
  }
}

</mosaic_0001>

<bundles_post_ra>
// kernel: _cgkr_forward_padded.1
= control target key start
LH: loop header
LB: loop body
LE: loop exit
PB: predicated region body
PF: predicated region fallthrough
CT: control target
= control target key end

     0   :  { %11 = vsyncpa [#allocation4], 0  ;;  %s1487_s0 = inlined_call_operand.hbm [shape: bf16[128,128], index: 0, kind: input, shape index: {}]   ;;  %s1488_s1 = inlined_call_operand.hbm [shape: bf16[128,128], index: 1, kind: input, shape index: {}]   ;;  %s1489_s2 = inlined_call_operand.hbm [shape: f32[128,128], index: 2, kind: input, shape index: {}]   ;;  %s1490_s3 = inlined_call_operand.hbm [shape: f32[16,128], index: 3, kind: input, shape index: {}]   ;;  %s1491_s4 = inlined_call_operand.vmem [shape: f32[128,128], index: 4, kind: output, shape index: {0}]   ;;  %s1492_s5 = inlined_call_operand.vmem [shape: f32[128,128], index: 5, kind: output, shape index: {1}]  }
   0x1   :  { %12 = vsyncpa [#allocation6], 0 }
   0x2   :  { %13 = vsyncpa [#allocation9], 0  ;;  %s1124_s18 = smov [#allocation5]   ;;  %s1125_s20 = smov [#allocation3]  }
   0x3   :  { %s31_s19 = sshll.u32 %s1124_s18, 4  ;;  %s19_s21 = sshll.u32 %s1125_s20, 4  ;;  %s32_s19 = int_to_ptr.vmem [resolvable:$true] %s31_s19  ;;  %s1162_s21 = int_to_ptr.vmem [resolvable:$true] %s19_s21 }
   0x4   :  { %s1030_s24 = scalar_lea.hbm %s1488_s1, 1024 }
   0x5   :  { %p1031_p0 = scmp.ne.s32.totalorder %s1488_s1, %s1030_s24  ;;  %p1034_p1 = scmp.lt.u32.totalorder %s1030_s24, %s1488_s1 }
   0x7   :  { %p1036_p2 = pnand %p1034_p1, %p1031_p0 }
   0x9   :  { %1039 = shalt.err (!%p1036_p2)
}
   0xa   :  { %s1040_s29 = scalar_lea.vmem %s32_s19, 1024  ;;  %p1045_p4 = scmp.lt.s32.totalorder %s32_s19, %s32_s19 }
   0xb   :  { %p1041_p3 = scmp.ne.s32.totalorder %s32_s19, %s1040_s29  ;;  %p1046_p5 = scmp.lt.s32.totalorder %s1040_s29, %s1040_s29 }
   0xd   :  { %p1047_p6 = por %p1046_p5, %p1045_p4 }
   0xf   :  { %p1048_p7 = pnand %p1047_p6, %p1041_p3 }
  0x11   :  { %1051 = shalt.err (!%p1048_p7)
}
  0x12   :  { %s1126_s30 = smov 64   ;;  %s1127_s6 = smov 4  }
  0x13   :  { %37 = dma.hbm_to_vmem [thread:$0]  %s1488_s1, 1024, %s32_s19, [#allocation6], %s1126_s30, %s1126_s30, %s1127_s6  }
  0x14   :  { %s1052_s11 = scalar_lea.hbm %s1487_s0, 1024 }
  0x15   :  { %p1053_p8 = scmp.ne.s32.totalorder %s1487_s0, %s1052_s11  ;;  %p1056_p9 = scmp.lt.u32.totalorder %s1052_s11, %s1487_s0 }
  0x17   :  { %p1058_p10 = pnand %p1056_p9, %p1053_p8 }
  0x19   :  { %1061 = shalt.err (!%p1058_p10)
}
  0x1a   :  { %s1062_s16 = scalar_lea.vmem %s1162_s21, 1024  ;;  %p1067_p12 = scmp.lt.s32.totalorder %s1162_s21, %s1162_s21 }
  0x1b   :  { %p1063_p11 = scmp.ne.s32.totalorder %s1162_s21, %s1062_s16  ;;  %p1068_p13 = scmp.lt.s32.totalorder %s1062_s16, %s1062_s16 }
  0x1d   :  { %p1069_p0 = por %p1068_p13, %p1067_p12 }
  0x1f   :  { %p1070_p1 = pnand %p1069_p0, %p1063_p11 }
  0x21   :  { %1073 = shalt.err (!%p1070_p1)
}
  0x22   :  { %25 = dma.hbm_to_vmem [thread:$0]  %s1487_s0, 1024, %s1162_s21, [#allocation4], %s1126_s30, %s1126_s30, %s1127_s6  }
  0x23   :  { %s1128_s18 = smov [#allocation7]   ;;  %s1074_s23 = scalar_lea.hbm %s1489_s2, 2048 }
  0x24   :  { %s43_s19 = sshll.u32 %s1128_s18, 4  ;;  %p1075_p2 = scmp.ne.s32.totalorder %s1489_s2, %s1074_s23  ;;  %s44_s19 = int_to_ptr.vmem [resolvable:$true] %s43_s19 }
  0x25   :  { %p1078_p3 = scmp.lt.u32.totalorder %s1074_s23, %s1489_s2 }
  0x27   :  { %p1080_p4 = pnand %p1078_p3, %p1075_p2 }
  0x29   :  { %1083 = shalt.err (!%p1080_p4)
}
  0x2a   :  { %s1084_s28 = scalar_lea.vmem %s44_s19, 2048  ;;  %p1089_p6 = scmp.lt.s32.totalorder %s44_s19, %s44_s19 }
  0x2b   :  { %p1085_p5 = scmp.ne.s32.totalorder %s44_s19, %s1084_s28  ;;  %p1090_p7 = scmp.lt.s32.totalorder %s1084_s28, %s1084_s28 }
  0x2d   :  { %p1091_p8 = por %p1090_p7, %p1089_p6 }
  0x2f   :  { %p1092_p9 = pnand %p1091_p8, %p1085_p5 }
  0x31   :  { %1095 = shalt.err (!%p1092_p9)
}
  0x32   :  { %s1129_s0 = smov 128   ;;  %s1130_s21 = smov 8  }
  0x33   :  { %49 = dma.hbm_to_vmem [thread:$0]  %s1489_s2, 2048, %s44_s19, [#allocation6], %s1129_s0, %s1129_s0, %s1130_s21  }
  0x34   :  { %s1131_s6 = smov [#allocation8]   ;;  %s1096_s10 = scalar_lea.hbm %s1490_s3, 256 }
  0x35   :  { %s55_s7 = sshll.u32 %s1131_s6, 4  ;;  %p1097_p10 = scmp.ne.s32.totalorder %s1490_s3, %s1096_s10  ;;  %s56_s7 = int_to_ptr.vmem [resolvable:$true] %s55_s7 }
  0x36   :  { %p1100_p11 = scmp.lt.u32.totalorder %s1096_s10, %s1490_s3 }
  0x38   :  { %p1102_p12 = pnand %p1100_p11, %p1097_p10 }
  0x3a   :  { %1105 = shalt.err (!%p1102_p12)
}
  0x3b   :  { %s1106_s15 = scalar_lea.vmem %s56_s7, 256  ;;  %p1111_p0 = scmp.lt.s32.totalorder %s56_s7, %s56_s7 }
  0x3c   :  { %p1107_p13 = scmp.ne.s32.totalorder %s56_s7, %s1106_s15  ;;  %p1112_p1 = scmp.lt.s32.totalorder %s1106_s15, %s1106_s15 }
  0x3e   :  { %p1113_p2 = por %p1112_p1, %p1111_p0 }
  0x40   :  { %p1114_p3 = pnand %p1113_p2, %p1107_p13 }
  0x42   :  { %1117 = shalt.err (!%p1114_p3)
}
  0x43   :  { %61 = dma.hbm_to_vmem [thread:$0]  %s1490_s3, 256, %s56_s7, [#allocation9], %s1129_s0, %s1129_s0, %s1130_s21  }
  0x44   :  { %1118 = dma.done.wait [#allocation4], 1024  }
  0x45   :  { %1119 = vsyncadd [#allocation4], 4294966272 }
  0x46   :  { %1120 = dma.done.wait [#allocation6], 3072  }
  0x47   :  { %1121 = vsyncadd [#allocation6], 4294964224 }
  0x48   :  { %1122 = dma.done.wait [#allocation9], 256  }
  0x49   :  { %1123 = vsyncadd [#allocation9], 4294967040  ;;  %v1217_v0 = vld [vmem:[#allocation7] sm:$0xff]  ;;  %v1219_v1 = vld [vmem:[#allocation7 + $0x8] sm:$0xff] }
  0x4a   :  { %v1221_v2 = vld [vmem:[#allocation7 + $0x10] sm:$0xff]  ;;  %v107_v3 = vpack.c.bf16 %v1219_v1, %v1217_v0  ;;  %v1225_v4 = vld [vmem:[#allocation7 + $0x18] sm:$0xff]  ;;  %v1229_v6 = vld [vmem:[#allocation7 + $0x20] sm:$0xff] }
  0x4b   :  { %v108_v5 = vpack.c.bf16 %v1225_v4, %v1221_v2  ;;  %v1231_v7 = vld [vmem:[#allocation7 + $0x28] sm:$0xff]  ;;  %v1233_v8 = vld [vmem:[#allocation7 + $0x30] sm:$0xff]  ;;  %v1237_v10 = vld [vmem:[#allocation7 + $0x38] sm:$0xff] }
  0x4c   :  { %890 = vmatprep.subr.bf16.mxu0 %v107_v3  ;;  %v109_v9 = vpack.c.bf16 %v1231_v7, %v1229_v6  ;;  %v1014_v11 = vld [vmem:[#allocation3] sm:$0xff]   ;;  %v110_v12 = vpack.c.bf16 %v1237_v10, %v1233_v8  ;;  %v1243_v14 = vld [vmem:[#allocation7 + $0x48] sm:$0xff]  ;;  %v1245_v15 = vld [vmem:[#allocation7 + $0x50] sm:$0xff] }
  0x4d   :  { %891 = vmatpush3.bf16.msra.mxu0 %v107_v3  ;;  %906 = vmatprep.mubr.bf16.mxu0 %v1014_v11  ;;  %v1241_v13 = vld [vmem:[#allocation7 + $0x40] sm:$0xff]  ;;  %v1249_v17 = vld [vmem:[#allocation7 + $0x58] sm:$0xff]  ;;  %v1255_v20 = vld [vmem:[#allocation7 + $0x68] sm:$0xff] }
  0x4e   :  { %892 = vmatprep.subr.bf16.mxu0 %v108_v5  ;;  %938 = vmatprep.mubr.bf16.mxu1 %v1014_v11  ;;  %v111_v16 = vpack.c.bf16 %v1243_v14, %v1241_v13  ;;  %v1251_v18 = vld [vmem:[#allocation7 + $0x60] sm:$0xff]  ;;  %v112_v19 = vpack.c.bf16 %v1249_v17, %v1245_v15  ;;  %v1259_v22 = vld [vmem:[#allocation7 + $0x70] sm:$0xff]  ;;  %v1261_v23 = vld [vmem:[#allocation7 + $0x78] sm:$0xff] }
  0x4f   :  { %v113_v21 = vpack.c.bf16 %v1255_v20, %v1251_v18  ;;  %v114_v24 = vpack.c.bf16 %v1261_v23, %v1259_v22  ;;  %v1015_v25 = vld [vmem:[#allocation3 + $0x8] sm:$0xff]   ;;  %v1016_v26 = vld [vmem:[#allocation3 + $0x10] sm:$0xff]   ;;  %v1017_v27 = vld [vmem:[#allocation3 + $0x18] sm:$0xff]  }
  0x50   :  { %v1018_v28 = vld [vmem:[#allocation3 + $0x20] sm:$0xff]   ;;  %v1019_v29 = vld [vmem:[#allocation3 + $0x28] sm:$0xff]   ;;  %v1020_v30 = vld [vmem:[#allocation3 + $0x30] sm:$0xff]  }
  0x51   :  { %893 = vmatpush3.bf16.msra.mxu0 %v108_v5  ;;  %v1021_v31 = vld [vmem:[#allocation3 + $0x38] sm:$0xff]   ;;  %v1265_v32 = vld [vmem:[#allocation8] sm:$0xff]  ;;  %v1267_v33 = vld [vmem:[#allocation8 + $0x8] sm:$0xff] }
  0x52   :  { %894 = vmatprep.subr.bf16.mxu0 %v109_v9  ;;  %v483_v34 = vpack.c.bf16 %v1267_v33, %v1265_v32  ;;  %v1022_v59 = vld [vmem:[#allocation5] sm:$0xff]  }
  0x55   :  { %895 = vmatpush3.bf16.msra.mxu0 %v109_v9 }
  0x56   :  { %896 = vmatprep.subr.bf16.mxu0 %v110_v12 }
  0x59   :  { %897 = vmatpush3.bf16.msra.mxu0 %v110_v12 }
  0x5a   :  { %898 = vmatprep.subr.bf16.mxu0 %v111_v16 }
  0x5d   :  { %899 = vmatpush3.bf16.msra.mxu0 %v111_v16 }
  0x5e   :  { %900 = vmatprep.subr.bf16.mxu0 %v112_v19 }
  0x61   :  { %901 = vmatpush3.bf16.msra.mxu0 %v112_v19 }
  0x62   :  { %902 = vmatprep.subr.bf16.mxu0 %v113_v21 }
  0x65   :  { %903 = vmatpush3.bf16.msra.mxu0 %v113_v21 }
  0x66   :  { %904 = vmatprep.subr.bf16.mxu0 %v114_v24 }
  0x69   :  { %905 = vmatpush3.bf16.msra.mxu0 %v114_v24 }
  0x6a   :  { %954 = vmatprep.subr.bf16.mxu0 %v483_v34 }
  0x6c   :  { %907 = vmatmul.mubr.bf16.vlgmr.msra.gmra.mrb[0].mxu0 %v1015_v25 }
  0x6d   :  { %910 = vmatprep.mubr.bf16.mxu0 %v1016_v26  ;;  %955 = vmatpush3.bf16.msra.mxu0 %v483_v34 }
  0x74   :  { %911 = vmatmul.mubr.bf16.gmra.mrb[4].mxu0 %v1017_v27 }
  0x75   :  { %914 = vmatprep.mubr.bf16.mxu0 %v1018_v28 }
  0x7c   :  { %915 = vmatmul.mubr.bf16.gmra.mrb[8].mxu0 %v1019_v29 }
  0x7d   :  { %918 = vmatprep.mubr.bf16.mxu0 %v1020_v30 }
  0x84   :  { %919 = vmatmul.mubr.bf16.gmra.mrb[12].mxu0 %v1021_v31 }
  0x85   :  { %958 = vmatprep.mubr.bf16.mxu0 %v1022_v59 }
 0x13f   :  { %v908_v35 = vpop.f32.mrb[0].mxu0 }
 0x140   :  { %v197_v36 = vpop.f32.mrb[1].mxu0  ;;  %v262_v60 = vadd.f32 %v908_v35, %v1221_v2 }
 0x141   :  { %v909_v37 = vpop.f32.mrb[2].mxu0  ;;  %v260_v61 = vadd.f32 %v197_v36, %v1217_v0 }
 0x142   :  { %v277_v38 = vpack.c.bf16 %v909_v37, %v908_v35  ;;  %v200_v39 = vpop.f32.mrb[3].mxu0  ;;  %v263_v63 = vadd.f32 %v909_v37, %v1225_v4 }
 0x143   :  { %v276_v40 = vpack.c.bf16 %v200_v39, %v197_v36  ;;  %v261_v9 = vadd.f32 %v200_v39, %v1219_v1 }
 0x145   :  { %922 = vmatprep.subr.bf16.mxu1 %v276_v40 }
 0x146   :  { %923 = vmatpush3.bf16.msra.mxu1 %v276_v40 }
 0x147   :  { %v912_v41 = vpop.f32.mrb[4].mxu0  ;;  %924 = vmatprep.subr.bf16.mxu1 %v277_v38 }
 0x148   :  { %v213_v42 = vpop.f32.mrb[5].mxu0  ;;  %v266_v1 = vadd.f32 %v912_v41, %v1233_v8 }
 0x149   :  { %v1271_v43 = vpop.f32.mrb[6].mxu0  ;;  %v264_v4 = vadd.f32 %v213_v42, %v1229_v6  ;;  %v1331_v6 = vld [vmem:[#allocation5 + $0x8] sm:$0xff]  }
 0x14a   :  { %v279_v44 = vpack.c.bf16 %v1271_v43, %v912_v41  ;;  %v1274_v45 = vpop.f32.mrb[7].mxu0  ;;  %925 = vmatpush3.bf16.msra.mxu1 %v277_v38  ;;  %v1333_v38 = vld [vmem:[#allocation5 + $0x10] sm:$0xff]  }
 0x14b   :  { %v278_v46 = vpack.c.bf16 %v1274_v45, %v213_v42 }
 0x14d   :  { %926 = vmatprep.subr.bf16.mxu1 %v278_v46 }
 0x14e   :  { %927 = vmatpush3.bf16.msra.mxu1 %v278_v46 }
 0x14f   :  { %v1277_v47 = vpop.f32.mrb[8].mxu0  ;;  %928 = vmatprep.subr.bf16.mxu1 %v279_v44 }
 0x150   :  { %v1279_v48 = vpop.f32.mrb[9].mxu0  ;;  %v270_v41 = vadd.f32 %v1277_v47, %v1245_v15 }
 0x151   :  { %v1281_v49 = vpop.f32.mrb[10].mxu0  ;;  %v268_v42 = vadd.f32 %v1279_v48, %v1241_v13 }
 0x152   :  { %v281_v50 = vpack.c.bf16 %v1281_v49, %v1277_v47  ;;  %v1285_v51 = vpop.f32.mrb[11].mxu0  ;;  %929 = vmatpush3.bf16.msra.mxu1 %v279_v44  ;;  %v271_v44 = vadd.f32 %v1281_v49, %v1249_v17 }
 0x153   :  { %v280_v52 = vpack.c.bf16 %v1285_v51, %v1279_v48  ;;  %v269_v15 = vadd.f32 %v1285_v51, %v1243_v14  ;;  %v1359_v48 = vld [vmem:[#allocation5 + $0x20] sm:$0xff]  }
 0x155   :  { %930 = vmatprep.subr.bf16.mxu1 %v280_v52 }
 0x156   :  { %931 = vmatpush3.bf16.msra.mxu1 %v280_v52  ;;  %v1357_v52 = vld [vmem:[#allocation5 + $0x18] sm:$0xff]  }
 0x157   :  { %v1289_v53 = vpop.f32.mrb[12].mxu0  ;;  %932 = vmatprep.subr.bf16.mxu1 %v281_v50 }
 0x158   :  { %v1291_v54 = vpop.f32.mrb[13].mxu0  ;;  %v274_v49 = vadd.f32 %v1289_v53, %v1259_v22 }
 0x159   :  { %v1293_v55 = vpop.f32.mrb[14].mxu0  ;;  %v272_v51 = vadd.f32 %v1291_v54, %v1251_v18  ;;  %v1028_v18 = vld [vmem:[#allocation5 + $0x30] sm:$0xff]  }
 0x15a   :  { %v283_v56 = vpack.c.bf16 %v1293_v55, %v1289_v53  ;;  %v1297_v57 = vpop.f32.mrb[15].mxu0  ;;  %933 = vmatpush3.bf16.msra.mxu1 %v281_v50 }
 0x15b   :  { %v282_v58 = vpack.c.bf16 %v1297_v57, %v1291_v54  ;;  %v273_v22 = vadd.f32 %v1297_v57, %v1255_v20  ;;  %v1029_v20 = vld [vmem:[#allocation5 + $0x38] sm:$0xff]  }
 0x15d   :  { %934 = vmatprep.subr.bf16.mxu1 %v282_v58 }
 0x15e   :  { %935 = vmatpush3.bf16.msra.mxu1 %v282_v58 }
 0x15f   :  { %936 = vmatprep.subr.bf16.mxu1 %v283_v56 }
 0x162   :  { %937 = vmatpush3.bf16.msra.mxu1 %v283_v56 }
 0x165   :  { %939 = vmatmul.mubr.bf16.vlgmr.msra.gmra.mrb[0].mxu1 %v1015_v25 }
 0x166   :  { %942 = vmatprep.mubr.bf16.mxu1 %v1016_v26 }
 0x16d   :  { %943 = vmatmul.mubr.bf16.gmra.mrb[4].mxu1 %v1017_v27 }
 0x16e   :  { %946 = vmatprep.mubr.bf16.mxu1 %v1018_v28  ;;  %v267_v28 = vadd.f32 %v1271_v43, %v1237_v10 }
 0x175   :  { %947 = vmatmul.mubr.bf16.gmra.mrb[8].mxu1 %v1019_v29 }
 0x176   :  { %950 = vmatprep.mubr.bf16.mxu1 %v1020_v30  ;;  %v265_v30 = vadd.f32 %v1274_v45, %v1231_v7 }
 0x17d   :  { %951 = vmatmul.mubr.bf16.gmra.mrb[12].mxu1 %v1021_v31 }
 0x17e   :  { %990 = vmatprep.mubr.bf16.mxu1 %v1022_v59 }
 0x238   :  { %v940_v62 = vpop.f32.mrb[0].mxu1 }
 0x239   :  { %v383_v3 = vadd.f32 %v940_v62, %v262_v60  ;;  %v318_v5 = vpop.f32.mrb[1].mxu1  ;;  %v275_v62 = vadd.f32 %v1293_v55, %v1261_v23 }
 0x23a   :  { %v381_v11 = vadd.f32 %v318_v5, %v260_v61  ;;  %v941_v12 = vpop.f32.mrb[2].mxu1 }
 0x23b   :  { %v399_v16 = vmul.f32 0.33333334, %v383_v3  ;;  %v384_v19 = vadd.f32 %v941_v12, %v263_v63  ;;  %v321_v21 = vpop.f32.mrb[3].mxu1 }
 0x23c   :  { %v1305_v24 = vmul.f32 0.33333334, %v381_v11  ;;  %v382_v25 = vadd.f32 %v321_v21, %v261_v9  ;;  %v1027_v9 = vld [vmem:[#allocation5 + $0x28] sm:$0xff]  }
 0x23d   :  { %415 = vst [vmem:[%s1491_s4 + $0x10] sm:$0xff] %v399_v16  ;;  %v400_v0 = vmul.f32 0.33333334, %v384_v19 }
 0x23e   :  { %413 = vst [vmem:[%s1491_s4] sm:$0xff] %v1305_v24  ;;  %v1314_v2 = vmul.f32 0.33333334, %v382_v25 }
 0x23f   :  { %416 = vst [vmem:[%s1491_s4 + $0x18] sm:$0xff] %v400_v0 }
 0x240   :  { %414 = vst [vmem:[%s1491_s4 + $0x8] sm:$0xff] %v1314_v2  ;;  %v944_v26 = vpop.f32.mrb[4].mxu1  ;;  %v484_v27 = vpack.c.bf16 %v1314_v2, %v1305_v24 }
 0x241   :  { %v387_v29 = vadd.f32 %v944_v26, %v266_v1  ;;  %v334_v8 = vpop.f32.mrb[5].mxu1 }
 0x242   :  { %v385_v31 = vadd.f32 %v334_v8, %v264_v4  ;;  %v945_v34 = vpop.f32.mrb[6].mxu1  ;;  %956 = vmatprep.subr.bf16.mxu0 %v484_v27 }
 0x243   :  { %v403_v35 = vmul.f32 0.33333334, %v387_v29  ;;  %v388_v36 = vadd.f32 %v945_v34, %v267_v28  ;;  %v337_v37 = vpop.f32.mrb[7].mxu1  ;;  %957 = vmatpush3.bf16.msra.mxu0 %v484_v27 }
 0x244   :  { %v401_v39 = vmul.f32 0.33333334, %v385_v31  ;;  %v386_v40 = vadd.f32 %v337_v37, %v265_v30 }
 0x245   :  { %419 = vst [vmem:[%s1491_s4 + $0x30] sm:$0xff] %v403_v35  ;;  %v404_v10 = vmul.f32 0.33333334, %v388_v36 }
 0x246   :  { %417 = vst [vmem:[%s1491_s4 + $0x20] sm:$0xff] %v401_v39  ;;  %v402_v7 = vmul.f32 0.33333334, %v386_v40  ;;  %959 = vmatmul.mubr.bf16.vlgmr.msra.gmra.mrb[16].mxu0 %v1331_v6 }
 0x247   :  { %420 = vst [vmem:[%s1491_s4 + $0x38] sm:$0xff] %v404_v10  ;;  %962 = vmatprep.mubr.bf16.mxu0 %v1333_v38 }
 0x248   :  { %418 = vst [vmem:[%s1491_s4 + $0x28] sm:$0xff] %v402_v7  ;;  %v948_v43 = vpop.f32.mrb[8].mxu1 }
 0x249   :  { %v391_v45 = vadd.f32 %v948_v43, %v270_v41  ;;  %v350_v46 = vpop.f32.mrb[9].mxu1 }
 0x24a   :  { %v389_v47 = vadd.f32 %v350_v46, %v268_v42  ;;  %v949_v50 = vpop.f32.mrb[10].mxu1 }
 0x24b   :  { %v407_v56 = vmul.f32 0.33333334, %v391_v45  ;;  %v392_v58 = vadd.f32 %v949_v50, %v271_v44  ;;  %v353_v13 = vpop.f32.mrb[11].mxu1 }
 0x24c   :  { %v405_v59 = vmul.f32 0.33333334, %v389_v47  ;;  %v390_v60 = vadd.f32 %v353_v13, %v269_v15 }
 0x24d   :  { %423 = vst [vmem:[%s1491_s4 + $0x50] sm:$0xff] %v407_v56  ;;  %v408_v17 = vmul.f32 0.33333334, %v392_v58 }
 0x24e   :  { %421 = vst [vmem:[%s1491_s4 + $0x40] sm:$0xff] %v405_v59  ;;  %v406_v14 = vmul.f32 0.33333334, %v390_v60  ;;  %963 = vmatmul.mubr.bf16.gmra.mrb[20].mxu0 %v1357_v52 }
 0x24f   :  { %424 = vst [vmem:[%s1491_s4 + $0x58] sm:$0xff] %v408_v17  ;;  %966 = vmatprep.mubr.bf16.mxu0 %v1359_v48 }
 0x250   :  { %422 = vst [vmem:[%s1491_s4 + $0x48] sm:$0xff] %v406_v14  ;;  %v952_v61 = vpop.f32.mrb[12].mxu1 }
 0x251   :  { %v395_v63 = vadd.f32 %v952_v61, %v274_v49  ;;  %v366_v3 = vpop.f32.mrb[13].mxu1 }
 0x252   :  { %v393_v53 = vadd.f32 %v366_v3, %v272_v51  ;;  %v953_v5 = vpop.f32.mrb[14].mxu1 }
 0x253   :  { %v411_v11 = vmul.f32 0.33333334, %v395_v63  ;;  %v396_v12 = vadd.f32 %v953_v5, %v275_v62  ;;  %v369_v16 = vpop.f32.mrb[15].mxu1 }
 0x254   :  { %v409_v54 = vmul.f32 0.33333334, %v393_v53  ;;  %v394_v19 = vadd.f32 %v369_v16, %v273_v22 }
 0x255   :  { %427 = vst [vmem:[%s1491_s4 + $0x70] sm:$0xff] %v411_v11  ;;  %v412_v21 = vmul.f32 0.33333334, %v396_v12 }
 0x256   :  { %425 = vst [vmem:[%s1491_s4 + $0x60] sm:$0xff] %v409_v54  ;;  %v410_v23 = vmul.f32 0.33333334, %v394_v19  ;;  %967 = vmatmul.mubr.bf16.gmra.mrb[24].mxu0 %v1027_v9 }
 0x257   :  { %428 = vst [vmem:[%s1491_s4 + $0x78] sm:$0xff] %v412_v21  ;;  %970 = vmatprep.mubr.bf16.mxu0 %v1028_v18 }
 0x258   :  { %426 = vst [vmem:[%s1491_s4 + $0x68] sm:$0xff] %v410_v23 }
 0x25e   :  { %971 = vmatmul.mubr.bf16.gmra.mrb[28].mxu0 %v1029_v20 }
 0x319   :  { %v960_v55 = vpop.f32.mrb[16].mxu0 }
 0x31a   :  { %v573_v57 = vpop.f32.mrb[17].mxu0  ;;  %v638_v44 = vadd.f32 %v960_v55, %v1305_v24 }
 0x31b   :  { %v961_v25 = vpop.f32.mrb[18].mxu0  ;;  %v636_v45 = vadd.f32 %v573_v57, %v1265_v32 }
 0x31c   :  { %v653_v0 = vpack.c.bf16 %v961_v25, %v960_v55  ;;  %v576_v1 = vpop.f32.mrb[19].mxu0  ;;  %v639_v15 = vadd.f32 %v961_v25, %v1314_v2 }
 0x31d   :  { %v652_v4 = vpack.c.bf16 %v576_v1, %v573_v57 }
 0x31f   :  { %974 = vmatprep.subr.bf16.mxu1 %v652_v4 }
 0x320   :  { %975 = vmatpush3.bf16.msra.mxu1 %v652_v4 }
 0x321   :  { %v964_v26 = vpop.f32.mrb[20].mxu0  ;;  %976 = vmatprep.subr.bf16.mxu1 %v653_v0 }
 0x322   :  { %v589_v27 = vpop.f32.mrb[21].mxu0 }
 0x323   :  { %v965_v28 = vpop.f32.mrb[22].mxu0 }
 0x324   :  { %v655_v29 = vpack.c.bf16 %v965_v28, %v964_v26  ;;  %v1395_v8 = vpop.f32.mrb[23].mxu0  ;;  %977 = vmatpush3.bf16.msra.mxu1 %v653_v0 }
 0x325   :  { %v654_v30 = vpack.c.bf16 %v1395_v8, %v589_v27 }
 0x327   :  { %978 = vmatprep.subr.bf16.mxu1 %v654_v30 }
 0x328   :  { %979 = vmatpush3.bf16.msra.mxu1 %v654_v30 }
 0x329   :  { %v1398_v31 = vpop.f32.mrb[24].mxu0  ;;  %980 = vmatprep.subr.bf16.mxu1 %v655_v29 }
 0x32a   :  { %v1400_v34 = vpop.f32.mrb[25].mxu0 }
 0x32b   :  { %v1402_v35 = vpop.f32.mrb[26].mxu0 }
 0x32c   :  { %v657_v36 = vpack.c.bf16 %v1402_v35, %v1398_v31  ;;  %v1406_v37 = vpop.f32.mrb[27].mxu0  ;;  %981 = vmatpush3.bf16.msra.mxu1 %v655_v29 }
 0x32d   :  { %v656_v39 = vpack.c.bf16 %v1406_v37, %v1400_v34 }
 0x32f   :  { %982 = vmatprep.subr.bf16.mxu1 %v656_v39 }
 0x330   :  { %983 = vmatpush3.bf16.msra.mxu1 %v656_v39 }
 0x331   :  { %v1410_v40 = vpop.f32.mrb[28].mxu0  ;;  %984 = vmatprep.subr.bf16.mxu1 %v657_v36 }
 0x332   :  { %v1412_v10 = vpop.f32.mrb[29].mxu0 }
 0x333   :  { %v1414_v7 = vpop.f32.mrb[30].mxu0 }
 0x334   :  { %v659_v41 = vpack.c.bf16 %v1414_v7, %v1410_v40  ;;  %v1418_v42 = vpop.f32.mrb[31].mxu0  ;;  %985 = vmatpush3.bf16.msra.mxu1 %v657_v36 }
 0x335   :  { %v658_v43 = vpack.c.bf16 %v1418_v42, %v1412_v10 }
 0x337   :  { %986 = vmatprep.subr.bf16.mxu1 %v658_v43 }
 0x338   :  { %987 = vmatpush3.bf16.msra.mxu1 %v658_v43 }
 0x339   :  { %988 = vmatprep.subr.bf16.mxu1 %v659_v41 }
 0x33c   :  { %989 = vmatpush3.bf16.msra.mxu1 %v659_v41 }
 0x33f   :  { %991 = vmatmul.mubr.bf16.vlgmr.msra.gmra.mrb[16].mxu1 %v1331_v6  ;;  %v637_v6 = vadd.f32 %v576_v1, %v1267_v33 }
 0x340   :  { %994 = vmatprep.mubr.bf16.mxu1 %v1333_v38 }
 0x347   :  { %995 = vmatmul.mubr.bf16.gmra.mrb[20].mxu1 %v1357_v52 }
 0x348   :  { %998 = vmatprep.mubr.bf16.mxu1 %v1359_v48 }
 0x34f   :  { %999 = vmatmul.mubr.bf16.gmra.mrb[24].mxu1 %v1027_v9 }
 0x350   :  { %1002 = vmatprep.mubr.bf16.mxu1 %v1028_v18 }
 0x357   :  { %1003 = vmatmul.mubr.bf16.gmra.mrb[28].mxu1 %v1029_v20 }
 0x412   :  { %v992_v46 = vpop.f32.mrb[16].mxu1 }
 0x413   :  { %v759_v47 = vadd.f32 %v992_v46, %v638_v44  ;;  %v694_v50 = vpop.f32.mrb[17].mxu1 }
 0x414   :  { %v757_v56 = vadd.f32 %v694_v50, %v636_v45  ;;  %v993_v38 = vpop.f32.mrb[18].mxu1 }
 0x415   :  { %v775_v58 = vmul.f32 0.33333334, %v759_v47  ;;  %v760_v52 = vadd.f32 %v993_v38, %v639_v15  ;;  %v697_v13 = vpop.f32.mrb[19].mxu1 }
 0x416   :  { %v773_v48 = vmul.f32 0.33333334, %v757_v56  ;;  %v758_v59 = vadd.f32 %v697_v13, %v637_v6 }
 0x417   :  { %791 = vst [vmem:[%s1492_s5 + $0x10] sm:$0xff] %v775_v58  ;;  %v776_v24 = vmul.f32 0.33333334, %v760_v52 }
 0x418   :  { %789 = vst [vmem:[%s1492_s5] sm:$0xff] %v773_v48  ;;  %v774_v32 = vmul.f32 0.33333334, %v758_v59 }
 0x419   :  { %792 = vst [vmem:[%s1492_s5 + $0x18] sm:$0xff] %v776_v24 }
 0x41a   :  { %790 = vst [vmem:[%s1492_s5 + $0x8] sm:$0xff] %v774_v32  ;;  %v996_v33 = vpop.f32.mrb[20].mxu1 }
 0x41b   :  { %v763_v2 = vadd.f32 %v996_v33, %v964_v26  ;;  %v710_v60 = vpop.f32.mrb[21].mxu1 }
 0x41c   :  { %v761_v17 = vadd.f32 %v710_v60, %v589_v27  ;;  %v997_v14 = vpop.f32.mrb[22].mxu1 }
 0x41d   :  { %v779_v49 = vmul.f32 0.33333334, %v763_v2  ;;  %v764_v51 = vadd.f32 %v997_v14, %v965_v28  ;;  %v713_v61 = vpop.f32.mrb[23].mxu1 }
 0x41e   :  { %v777_v62 = vmul.f32 0.33333334, %v761_v17  ;;  %v762_v63 = vadd.f32 %v713_v61, %v1395_v8 }
 0x41f   :  { %795 = vst [vmem:[%s1492_s5 + $0x30] sm:$0xff] %v779_v49  ;;  %v780_v3 = vmul.f32 0.33333334, %v764_v51 }
 0x420   :  { %793 = vst [vmem:[%s1492_s5 + $0x20] sm:$0xff] %v777_v62  ;;  %v778_v22 = vmul.f32 0.33333334, %v762_v63 }
 0x421   :  { %796 = vst [vmem:[%s1492_s5 + $0x38] sm:$0xff] %v780_v3 }
 0x422   :  { %794 = vst [vmem:[%s1492_s5 + $0x28] sm:$0xff] %v778_v22  ;;  %v1000_v53 = vpop.f32.mrb[24].mxu1 }
 0x423   :  { %v767_v5 = vadd.f32 %v1000_v53, %v1398_v31  ;;  %v726_v9 = vpop.f32.mrb[25].mxu1 }
 0x424   :  { %v765_v11 = vadd.f32 %v726_v9, %v1400_v34  ;;  %v1001_v12 = vpop.f32.mrb[26].mxu1 }
 0x425   :  { %v783_v16 = vmul.f32 0.33333334, %v767_v5  ;;  %v768_v18 = vadd.f32 %v1001_v12, %v1402_v35  ;;  %v729_v54 = vpop.f32.mrb[27].mxu1 }
 0x426   :  { %v781_v19 = vmul.f32 0.33333334, %v765_v11  ;;  %v766_v21 = vadd.f32 %v729_v54, %v1406_v37 }
 0x427   :  { %799 = vst [vmem:[%s1492_s5 + $0x50] sm:$0xff] %v783_v16  ;;  %v784_v23 = vmul.f32 0.33333334, %v768_v18 }
 0x428   :  { %797 = vst [vmem:[%s1492_s5 + $0x40] sm:$0xff] %v781_v19  ;;  %v782_v20 = vmul.f32 0.33333334, %v766_v21 }
 0x429   :  { %800 = vst [vmem:[%s1492_s5 + $0x58] sm:$0xff] %v784_v23 }
 0x42a   :  { %798 = vst [vmem:[%s1492_s5 + $0x48] sm:$0xff] %v782_v20  ;;  %v1004_v55 = vpop.f32.mrb[28].mxu1 }
 0x42b   :  { %v771_v57 = vadd.f32 %v1004_v55, %v1410_v40  ;;  %v742_v25 = vpop.f32.mrb[29].mxu1 }
 0x42c   :  { %v769_v0 = vadd.f32 %v742_v25, %v1412_v10  ;;  %v1005_v1 = vpop.f32.mrb[30].mxu1 }
 0x42d   :  { %v787_v4 = vmul.f32 0.33333334, %v771_v57  ;;  %v772_v26 = vadd.f32 %v1005_v1, %v1414_v7  ;;  %v745_v27 = vpop.f32.mrb[31].mxu1 }
 0x42e   :  { %v785_v28 = vmul.f32 0.33333334, %v769_v0  ;;  %v770_v29 = vadd.f32 %v745_v27, %v1418_v42 }
 0x42f   :  { %803 = vst [vmem:[%s1492_s5 + $0x70] sm:$0xff] %v787_v4  ;;  %v788_v8 = vmul.f32 0.33333334, %v772_v26 }
 0x430   :  { %801 = vst [vmem:[%s1492_s5 + $0x60] sm:$0xff] %v785_v28  ;;  %v786_v30 = vmul.f32 0.33333334, %v770_v29 }
 0x431   :  { %804 = vst [vmem:[%s1492_s5 + $0x78] sm:$0xff] %v788_v8 }
 0x432   :  { %802 = vst [vmem:[%s1492_s5 + $0x68] sm:$0xff] %v786_v30 }
 0x433   :  { %813 = vsyncpa [#allocation4], 1 }
 0x434   :  { %814 = vsyncpa [#allocation6], 1 }
 0x435   :  { %815 = vsyncpa [#allocation9], 1 }

</bundles_post_ra>
